<compile_context>
chip_gen: v7x
topology: tpu7x:2x2x1
jax: 0.10.0
libtpu: 0.0.40
codegen_flags: <defaults>
</compile_context>

<pallas_src>
import jax
import jax.numpy as jnp
from jax.experimental import pallas as pl
from jax.experimental.pallas import tpu as pltpu

HOLIDAY_DIM = 120
YEAR_VOCAB, MONTH_VOCAB, DAY_VOCAB, WEEKDAY_VOCAB = 51, 13, 32, 8

# Fused-row offsets inside the 128-row multi-hot weight (all < 128 -> each
# offset-added index fits in one byte of the packed int32).
YEAR_OFF = 0
MONTH_OFF = YEAR_OFF + YEAR_VOCAB        # 51
DAY_OFF = MONTH_OFF + MONTH_VOCAB        # 64
WEEKDAY_OFF = DAY_OFF + DAY_VOCAB        # 96
BIAS_ROW = WEEKDAY_OFF + WEEKDAY_VOCAB   # 104
EMB_K = 128                              # lane-aligned multi-hot contraction


def _round_up(x, m):
    return (x + m - 1) // m * m


def date_embeddings_kernel(idx_ref, hol_ref, w_emb_ref, w_hol_ref, out_ref):
    tm = out_ref.shape[0]
    packed = idx_ref[...]                                          # (tm, 1) i32

    # Multi-hot activation (tm, 128): 4 one-hot sub-indices + constant-1 bias.
    lane = jax.lax.broadcasted_iota(jnp.int32, (tm, EMB_K), 1)
    onehot = lane == (packed & 0xFF)                               # year
    onehot |= lane == ((packed >> 8) & 0xFF)                       # month
    onehot |= lane == ((packed >> 16) & 0xFF)                      # day
    onehot |= lane == ((packed >> 24) & 0xFF)                      # weekday
    onehot |= lane == BIAS_ROW                                     # bias column

    # Two bf16 MXU pushes, f32 accumulate (operands are exact in bf16 except
    # the weights, which are shipped pre-rounded to bf16).
    acc = jnp.dot(onehot.astype(jnp.bfloat16), w_emb_ref[...],
                  preferred_element_type=jnp.float32)
    acc += jnp.dot(hol_ref[...].astype(jnp.bfloat16), w_hol_ref[...],
                   preferred_element_type=jnp.float32)
    out_ref[...] = acc.astype(out_ref.dtype)


def _pack_weights(params):
    """Fuse tables + bias into (128, Hp) and the Linear weight into (120, Hp), bf16."""
    H = params["year_tab"].shape[1]
    Hp = _round_up(H, 128)
    w_emb = jnp.zeros((EMB_K, Hp), jnp.float32)
    w_emb = w_emb.at[YEAR_OFF:YEAR_OFF + YEAR_VOCAB, :H].set(params["year_tab"])
    w_emb = w_emb.at[MONTH_OFF:MONTH_OFF + MONTH_VOCAB, :H].set(params["month_tab"])
    w_emb = w_emb.at[DAY_OFF:DAY_OFF + DAY_VOCAB, :H].set(params["day_tab"])
    w_emb = w_emb.at[WEEKDAY_OFF:WEEKDAY_OFF + WEEKDAY_VOCAB, :H].set(params["weekday_tab"])
    w_emb = w_emb.at[BIAS_ROW, :H].set(params["hol_b"].reshape(-1))
    w_hol = jnp.zeros((HOLIDAY_DIM, Hp), jnp.float32)
    w_hol = w_hol.at[:, :H].set(params["hol_w"])
    return w_emb.astype(jnp.bfloat16), w_hol.astype(jnp.bfloat16)


def _vmem_capacity_bytes():
    try:
        return int(pltpu.get_tpu_info().vmem_capacity_bytes)
    except Exception:
        return 64 << 20   # conservative: v7x per-TensorCore VMEM


def date_embeddings(year, month, day, weekday, holidays, params, *,
                    tile_rows=1024, out_dtype=jnp.float32):
    """year/month/day/weekday: (B, S) int; holidays: (B, S, 120) any dtype."""
    B, S = year.shape
    H = params["year_tab"].shape[1]
    Hp = _round_up(H, 128)
    N = B * S

    # One int32 per row: offset-added sub-indices, one per byte (all < 128).
    idx = ((year.reshape(N).astype(jnp.int32) + YEAR_OFF)
           | ((month.reshape(N).astype(jnp.int32) + MONTH_OFF) << 8)
           | ((day.reshape(N).astype(jnp.int32) + DAY_OFF) << 16)
           | ((weekday.reshape(N).astype(jnp.int32) + WEEKDAY_OFF) << 24))[:, None]

    # Holidays stay in the caller's dtype (kernel casts to bf16); no pad/copy.
    hol = holidays.reshape(N, HOLIDAY_DIM)
    w_emb, w_hol = _pack_weights(params)

    hol_item = jnp.dtype(hol.dtype).itemsize
    out_item = jnp.dtype(out_dtype).itemsize

    # VMEM accounting: (tm, 1) i32 index block lane-pads to 128 lanes, the
    # (tm, 120) holiday block to 128; weights counted double-buffered (worst
    # case, covers the non-Buffered fallback).
    per_row = 128 * 4 + 128 * hol_item + Hp * out_item
    weight_bytes = 2 * (EMB_K + HOLIDAY_DIM) * Hp * 2
    budget = int(0.75 * _vmem_capacity_bytes())

    tm = _round_up(min(tile_rows, max(N, 8)), 8)
    while tm > 8 and 2 * tm * per_row + weight_bytes + (4 << 20) > budget:
        tm = max(8, _round_up(tm // 2, 8))
    if pl.cdiv(N, tm) < 2 and N > 8:           # >= 2 grid steps for v7x's 2 TCs
        tm = _round_up(pl.cdiv(N, 2), 8)

    needed = 2 * tm * per_row + weight_bytes + (4 << 20)
    vmem_limit = int(min(max(needed, 16 << 20), budget))

    cost = pl.CostEstimate(
        flops=2 * N * (EMB_K + HOLIDAY_DIM) * Hp,
        transcendentals=0,
        bytes_accessed=(N * 4 + N * HOLIDAY_DIM * hol_item
                        + (EMB_K + HOLIDAY_DIM) * Hp * 2 + N * Hp * out_item))

    def call(single_buffered_weights):
        wkw = dict(pipeline_mode=pl.Buffered(1)) if single_buffered_weights else {}
        return pl.pallas_call(
            date_embeddings_kernel,
            out_shape=jax.ShapeDtypeStruct((N, Hp), out_dtype),
            grid=(pl.cdiv(N, tm),),
            in_specs=[
                pl.BlockSpec((tm, 1), lambda i: (i, 0)),             # packed idx
                pl.BlockSpec((tm, HOLIDAY_DIM), lambda i: (i, 0)),   # holidays
                pl.BlockSpec((EMB_K, Hp), lambda i: (0, 0), **wkw),  # resident w_emb
                pl.BlockSpec((HOLIDAY_DIM, Hp), lambda i: (0, 0), **wkw),  # resident w_hol
            ],
            out_specs=pl.BlockSpec((tm, Hp), lambda i: (i, 0)),
            compiler_params=pltpu.CompilerParams(
                dimension_semantics=("parallel",),
                vmem_limit_bytes=vmem_limit),
            cost_estimate=cost,
        )(idx, hol, w_emb, w_hol)

    try:
        out = call(True)
    except Exception:
        out = call(False)   # fallback if Buffered(1) is rejected by this JAX build

    if Hp != H:
        out = out[:, :H]
    return out.reshape(B, S, H)


def init_params(key, hidden_size):
    keys = jax.random.split(key, 6)
    bound = 1.0 / jnp.sqrt(HOLIDAY_DIM)
    return {
        "year_tab": jax.random.normal(keys[0], (YEAR_VOCAB, hidden_size), jnp.float32),
        "month_tab": jax.random.normal(keys[1], (MONTH_VOCAB, hidden_size), jnp.float32),
        "day_tab": jax.random.normal(keys[2], (DAY_VOCAB, hidden_size), jnp.float32),
        "weekday_tab": jax.random.normal(keys[3], (WEEKDAY_VOCAB, hidden_size), jnp.float32),
        # stored transposed vs. PyTorch Linear.weight (H, 120) -> (120, H)
        "hol_w": jax.random.uniform(keys[4], (HOLIDAY_DIM, hidden_size), jnp.float32,
                                    minval=-bound, maxval=bound),
        "hol_b": jax.random.uniform(keys[5], (1, hidden_size), jnp.float32,
                                    minval=-bound, maxval=bound),
    }


def reference(year, month, day, weekday, holidays, params):
    # Match the kernel's operand precision: weights rounded to bf16, f32 math.
    q = lambda a: a.astype(jnp.bfloat16).astype(jnp.float32)
    ye = q(params["year_tab"])[year]
    mo = q(params["month_tab"])[month]
    da = q(params["day_tab"])[day]
    wd = q(params["weekday_tab"])[weekday]
    ho = (holidays.astype(jnp.bfloat16).astype(jnp.float32) @ q(params["hol_w"])
          + q(params["hol_b"])[0])
    return ye + mo + da + wd + ho


if __name__ == "__main__":
    B, S, H = 2, 8, 32
    key = jax.random.PRNGKey(0)
    kp, ky, km, kd, kw, kh = jax.random.split(key, 6)

    params = init_params(kp, H)

    year = jax.random.randint(ky, (B, S), 0, YEAR_VOCAB)
    month = jax.random.randint(km, (B, S), 0, MONTH_VOCAB)
    day = jax.random.randint(kd, (B, S), 0, DAY_VOCAB)
    weekday = jax.random.randint(kw, (B, S), 0, WEEKDAY_VOCAB)
    holidays = jax.random.bernoulli(kh, 0.1, (B, S, HOLIDAY_DIM)).astype(jnp.float32)

    out = date_embeddings(year, month, day, weekday, holidays, params)
    out = jax.block_until_ready(out)

    ref = reference(year, month, day, weekday, holidays, params)
    assert out.shape == (B, S, H)
    assert jnp.allclose(out, ref, atol=1e-3, rtol=1e-3), float(jnp.abs(out - ref).max())

    print("KERNEL_OK")
</pallas_src>

<mosaic_0001>
module attributes {stable_mosaic.version = 11 : i64} {
  func.func @date_embeddings_kernel(%arg0: i32, %arg1: memref<8x1xi32, #tpu.memory_space<vmem>>, %arg2: memref<8x120xf32, #tpu.memory_space<vmem>>, %arg3: memref<128x128xbf16, #tpu.memory_space<vmem>>, %arg4: memref<120x128xbf16, #tpu.memory_space<vmem>>, %arg5: memref<8x128xf32, #tpu.memory_space<vmem>>) attributes {dimension_semantics = [#tpu.dimension_semantics<parallel>], iteration_bounds = array<i64: 2>, scalar_prefetch = 0 : i64, scratch_operands = 0 : i64, tpu.core_type = #tpu.core_type<tc>, window_params = [{transform_indices = @transform_0, window_bounds = array<i64: 8, 1>}, {transform_indices = @transform_1, window_bounds = array<i64: 8, 120>}, {pipeline_mode = #tpu.pipeline_mode<synchronous>, transform_indices = @transform_2, window_bounds = array<i64: 128, 128>}, {pipeline_mode = #tpu.pipeline_mode<synchronous>, transform_indices = @transform_3, window_bounds = array<i64: 120, 128>}, {transform_indices = @transform_4, window_bounds = array<i64: 8, 128>}]} {
    %c0 = arith.constant 0 : index
    %c0_0 = arith.constant 0 : index
    %0 = vector.load %arg1[%c0, %c0_0] : memref<8x1xi32, #tpu.memory_space<vmem>>, vector<8x1xi32>
    %1 = tpu.iota {dimensions = array<i32: 1>} : vector<8x128xi32>
    %c255_i32 = arith.constant 255 : i32
    %2 = vector.broadcast %c255_i32 : i32 to vector<8x1xi32>
    %3 = arith.andi %0, %2 : vector<8x1xi32>
    %4 = vector.broadcast %3 : vector<8x1xi32> to vector<8x128xi32>
    %5 = arith.cmpi eq, %1, %4 : vector<8x128xi32>
    %c8_i32 = arith.constant 8 : i32
    %6 = vector.broadcast %c8_i32 : i32 to vector<8x1xi32>
    %7 = arith.shrsi %0, %6 : vector<8x1xi32>
    %c255_i32_1 = arith.constant 255 : i32
    %8 = vector.broadcast %c255_i32_1 : i32 to vector<8x1xi32>
    %9 = arith.andi %7, %8 : vector<8x1xi32>
    %10 = vector.broadcast %9 : vector<8x1xi32> to vector<8x128xi32>
    %11 = arith.cmpi eq, %1, %10 : vector<8x128xi32>
    %12 = arith.ori %5, %11 : vector<8x128xi1>
    %c16_i32 = arith.constant 16 : i32
    %13 = vector.broadcast %c16_i32 : i32 to vector<8x1xi32>
    %14 = arith.shrsi %0, %13 : vector<8x1xi32>
    %c255_i32_2 = arith.constant 255 : i32
    %15 = vector.broadcast %c255_i32_2 : i32 to vector<8x1xi32>
    %16 = arith.andi %14, %15 : vector<8x1xi32>
    %17 = vector.broadcast %16 : vector<8x1xi32> to vector<8x128xi32>
    %18 = arith.cmpi eq, %1, %17 : vector<8x128xi32>
    %19 = arith.ori %12, %18 : vector<8x128xi1>
    %c24_i32 = arith.constant 24 : i32
    %20 = vector.broadcast %c24_i32 : i32 to vector<8x1xi32>
    %21 = arith.shrsi %0, %20 : vector<8x1xi32>
    %c255_i32_3 = arith.constant 255 : i32
    %22 = vector.broadcast %c255_i32_3 : i32 to vector<8x1xi32>
    %23 = arith.andi %21, %22 : vector<8x1xi32>
    %24 = vector.broadcast %23 : vector<8x1xi32> to vector<8x128xi32>
    %25 = arith.cmpi eq, %1, %24 : vector<8x128xi32>
    %26 = arith.ori %19, %25 : vector<8x128xi1>
    %c104_i32 = arith.constant 104 : i32
    %27 = vector.broadcast %c104_i32 : i32 to vector<8x128xi32>
    %28 = arith.cmpi eq, %1, %27 : vector<8x128xi32>
    %29 = arith.ori %26, %28 : vector<8x128xi1>
    %30 = arith.extui %29 : vector<8x128xi1> to vector<8x128xi32>
    %31 = arith.sitofp %30 : vector<8x128xi32> to vector<8x128xf32>
    %32 = arith.truncf %31 : vector<8x128xf32> to vector<8x128xbf16>
    %c0_4 = arith.constant 0 : index
    %c0_5 = arith.constant 0 : index
    %33 = vector.load %arg3[%c0_4, %c0_5] : memref<128x128xbf16, #tpu.memory_space<vmem>>, vector<128x128xbf16>
    %cst = arith.constant dense<0.000000e+00> : vector<8x128xf32>
    %34 = tpu.matmul %32, %33, %cst {dimension_numbers = #tpu.dot_dimension_numbers<[1], [0], [0], [1], [0, 0, 1, 1], [], []>} : vector<8x128xbf16>, vector<128x128xbf16>, vector<8x128xf32> -> vector<8x128xf32>
    %c0_6 = arith.constant 0 : index
    %c0_7 = arith.constant 0 : index
    %35 = vector.load %arg2[%c0_6, %c0_7] : memref<8x120xf32, #tpu.memory_space<vmem>>, vector<8x120xf32>
    %36 = arith.truncf %35 : vector<8x120xf32> to vector<8x120xbf16>
    %c0_8 = arith.constant 0 : index
    %c0_9 = arith.constant 0 : index
    %37 = vector.load %arg4[%c0_8, %c0_9] : memref<120x128xbf16, #tpu.memory_space<vmem>>, vector<120x128xbf16>
    %cst_10 = arith.constant dense<0.000000e+00> : vector<8x128xf32>
    %38 = tpu.matmul %36, %37, %cst_10 {dimension_numbers = #tpu.dot_dimension_numbers<[1], [0], [0], [1], [0, 0, 1, 1], [], []>} : vector<8x120xbf16>, vector<120x128xbf16>, vector<8x128xf32> -> vector<8x128xf32>
    %39 = arith.addf %34, %38 : vector<8x128xf32>
    %c0_11 = arith.constant 0 : index
    %c0_12 = arith.constant 0 : index
    %40 = vector.load %arg5[%c0_11, %c0_12] : memref<8x128xf32, #tpu.memory_space<vmem>>, vector<8x128xf32>
    tpu.vector_store %arg5[%c0_11, %c0_12], %39 {strides = array<i32>} : memref<8x128xf32, #tpu.memory_space<vmem>>, vector<8x128xf32>,
    return
  }
  func.func @transform_0(%arg0: i32) -> (i32, i32) {
    %c0_i32 = arith.constant 0 : i32
    %c0_i32_0 = arith.constant 0 : i32
    return %arg0, %c0_i32 : i32, i32
  }
  func.func @transform_1(%arg0: i32) -> (i32, i32) {
    %c0_i32 = arith.constant 0 : i32
    %c0_i32_0 = arith.constant 0 : i32
    return %arg0, %c0_i32 : i32, i32
  }
  func.func @transform_2(%arg0: i32) -> (i32, i32) {
    %c0_i32 = arith.constant 0 : i32
    %c0_i32_0 = arith.constant 0 : i32
    %c0_i32_1 = arith.constant 0 : i32
    return %c0_i32, %c0_i32_0 : i32, i32
  }
  func.func @transform_3(%arg0: i32) -> (i32, i32) {
    %c0_i32 = arith.constant 0 : i32
    %c0_i32_0 = arith.constant 0 : i32
    %c0_i32_1 = arith.constant 0 : i32
    return %c0_i32, %c0_i32_0 : i32, i32
  }
  func.func @transform_4(%arg0: i32) -> (i32, i32) {
    %c0_i32 = arith.constant 0 : i32
    %c0_i32_0 = arith.constant 0 : i32
    return %arg0, %c0_i32 : i32, i32
  }
}

module attributes {stable_mosaic.version = 11 : i64} {
  func.func @date_embeddings_kernel(%arg0: i32, %arg1: memref<8x1xi32, #tpu.memory_space<vmem>>, %arg2: memref<8x120xf32, #tpu.memory_space<vmem>>, %arg3: memref<128x128xbf16, #tpu.memory_space<vmem>>, %arg4: memref<120x128xbf16, #tpu.memory_space<vmem>>, %arg5: memref<8x128xf32, #tpu.memory_space<vmem>>) attributes {dimension_semantics = [#tpu.dimension_semantics<parallel>], iteration_bounds = array<i64: 2>, scalar_prefetch = 0 : i64, scratch_operands = 0 : i64, tpu.core_type = #tpu.core_type<tc>, window_params = [{transform_indices = @transform_0, window_bounds = array<i64: 8, 1>}, {transform_indices = @transform_1, window_bounds = array<i64: 8, 120>}, {pipeline_mode = #tpu.pipeline_mode<synchronous>, transform_indices = @transform_2, window_bounds = array<i64: 128, 128>}, {pipeline_mode = #tpu.pipeline_mode<synchronous>, transform_indices = @transform_3, window_bounds = array<i64: 120, 128>}, {transform_indices = @transform_4, window_bounds = array<i64: 8, 128>}]} {
    %c0 = arith.constant 0 : index
    %c0_0 = arith.constant 0 : index
    %0 = vector.load %arg1[%c0, %c0_0] : memref<8x1xi32, #tpu.memory_space<vmem>>, vector<8x1xi32>
    %1 = tpu.iota {dimensions = array<i32: 1>} : vector<8x128xi32>
    %c255_i32 = arith.constant 255 : i32
    %2 = vector.broadcast %c255_i32 : i32 to vector<8x1xi32>
    %3 = arith.andi %0, %2 : vector<8x1xi32>
    %4 = vector.broadcast %3 : vector<8x1xi32> to vector<8x128xi32>
    %5 = arith.cmpi eq, %1, %4 : vector<8x128xi32>
    %c8_i32 = arith.constant 8 : i32
    %6 = vector.broadcast %c8_i32 : i32 to vector<8x1xi32>
    %7 = arith.shrsi %0, %6 : vector<8x1xi32>
    %c255_i32_1 = arith.constant 255 : i32
    %8 = vector.broadcast %c255_i32_1 : i32 to vector<8x1xi32>
    %9 = arith.andi %7, %8 : vector<8x1xi32>
    %10 = vector.broadcast %9 : vector<8x1xi32> to vector<8x128xi32>
    %11 = arith.cmpi eq, %1, %10 : vector<8x128xi32>
    %12 = arith.ori %5, %11 : vector<8x128xi1>
    %c16_i32 = arith.constant 16 : i32
    %13 = vector.broadcast %c16_i32 : i32 to vector<8x1xi32>
    %14 = arith.shrsi %0, %13 : vector<8x1xi32>
    %c255_i32_2 = arith.constant 255 : i32
    %15 = vector.broadcast %c255_i32_2 : i32 to vector<8x1xi32>
    %16 = arith.andi %14, %15 : vector<8x1xi32>
    %17 = vector.broadcast %16 : vector<8x1xi32> to vector<8x128xi32>
    %18 = arith.cmpi eq, %1, %17 : vector<8x128xi32>
    %19 = arith.ori %12, %18 : vector<8x128xi1>
    %c24_i32 = arith.constant 24 : i32
    %20 = vector.broadcast %c24_i32 : i32 to vector<8x1xi32>
    %21 = arith.shrsi %0, %20 : vector<8x1xi32>
    %c255_i32_3 = arith.constant 255 : i32
    %22 = vector.broadcast %c255_i32_3 : i32 to vector<8x1xi32>
    %23 = arith.andi %21, %22 : vector<8x1xi32>
    %24 = vector.broadcast %23 : vector<8x1xi32> to vector<8x128xi32>
    %25 = arith.cmpi eq, %1, %24 : vector<8x128xi32>
    %26 = arith.ori %19, %25 : vector<8x128xi1>
    %c104_i32 = arith.constant 104 : i32
    %27 = vector.broadcast %c104_i32 : i32 to vector<8x128xi32>
    %28 = arith.cmpi eq, %1, %27 : vector<8x128xi32>
    %29 = arith.ori %26, %28 : vector<8x128xi1>
    %30 = arith.extui %29 : vector<8x128xi1> to vector<8x128xi32>
    %31 = arith.sitofp %30 : vector<8x128xi32> to vector<8x128xf32>
    %32 = arith.truncf %31 : vector<8x128xf32> to vector<8x128xbf16>
    %c0_4 = arith.constant 0 : index
    %c0_5 = arith.constant 0 : index
    %33 = vector.load %arg3[%c0_4, %c0_5] : memref<128x128xbf16, #tpu.memory_space<vmem>>, vector<128x128xbf16>
    %cst = arith.constant dense<0.000000e+00> : vector<8x128xf32>
    %34 = tpu.matmul %32, %33, %cst {dimension_numbers = #tpu.dot_dimension_numbers<[1], [0], [0], [1], [0, 0, 1, 1], [], []>} : vector<8x128xbf16>, vector<128x128xbf16>, vector<8x128xf32> -> vector<8x128xf32>
    %c0_6 = arith.constant 0 : index
    %c0_7 = arith.constant 0 : index
    %35 = vector.load %arg2[%c0_6, %c0_7] : memref<8x120xf32, #tpu.memory_space<vmem>>, vector<8x120xf32>
    %36 = arith.truncf %35 : vector<8x120xf32> to vector<8x120xbf16>
    %c0_8 = arith.constant 0 : index
    %c0_9 = arith.constant 0 : index
    %37 = vector.load %arg4[%c0_8, %c0_9] : memref<120x128xbf16, #tpu.memory_space<vmem>>, vector<120x128xbf16>
    %cst_10 = arith.constant dense<0.000000e+00> : vector<8x128xf32>
    %38 = tpu.matmul %36, %37, %cst_10 {dimension_numbers = #tpu.dot_dimension_numbers<[1], [0], [0], [1], [0, 0, 1, 1], [], []>} : vector<8x120xbf16>, vector<120x128xbf16>, vector<8x128xf32> -> vector<8x128xf32>
    %39 = arith.addf %34, %38 : vector<8x128xf32>
    %c0_11 = arith.constant 0 : index
    %c0_12 = arith.constant 0 : index
    %40 = vector.load %arg5[%c0_11, %c0_12] : memref<8x128xf32, #tpu.memory_space<vmem>>, vector<8x128xf32>
    tpu.vector_store %arg5[%c0_11, %c0_12], %39 {strides = array<i32>} : memref<8x128xf32, #tpu.memory_space<vmem>>, vector<8x128xf32>,
    return
  }
  func.func @transform_0(%arg0: i32) -> (i32, i32) {
    %c0_i32 = arith.constant 0 : i32
    %c0_i32_0 = arith.constant 0 : i32
    return %arg0, %c0_i32 : i32, i32
  }
  func.func @transform_1(%arg0: i32) -> (i32, i32) {
    %c0_i32 = arith.constant 0 : i32
    %c0_i32_0 = arith.constant 0 : i32
    return %arg0, %c0_i32 : i32, i32
  }
  func.func @transform_2(%arg0: i32) -> (i32, i32) {
    %c0_i32 = arith.constant 0 : i32
    %c0_i32_0 = arith.constant 0 : i32
    %c0_i32_1 = arith.constant 0 : i32
    return %c0_i32, %c0_i32_0 : i32, i32
  }
  func.func @transform_3(%arg0: i32) -> (i32, i32) {
    %c0_i32 = arith.constant 0 : i32
    %c0_i32_0 = arith.constant 0 : i32
    %c0_i32_1 = arith.constant 0 : i32
    return %c0_i32, %c0_i32_0 : i32, i32
  }
  func.func @transform_4(%arg0: i32) -> (i32, i32) {
    %c0_i32 = arith.constant 0 : i32
    %c0_i32_0 = arith.constant 0 : i32
    return %arg0, %c0_i32 : i32, i32
  }
}

</mosaic_0001>

<bundles_post_ra>
// kernel: tpu_custom_call.1
= control target key start
LH: loop header
LB: loop body
LE: loop exit
PB: predicated region body
PF: predicated region fallthrough
CT: control target
= control target key end

     0   :  { %9 = vsyncpa [#allocation3], 0  ;;  %s1135_s0 = inlined_call_operand.vmem [shape: s32[16,1], index: 0, kind: input, shape index: {}]   ;;  %s1136_s1 = inlined_call_operand.vmem [shape: f32[16,120], index: 1, kind: input, shape index: {}]   ;;  %s1137_s2 = inlined_call_operand.hbm [shape: bf16[128,128], index: 2, kind: input, shape index: {}]   ;;  %s1138_s3 = inlined_call_operand.hbm [shape: bf16[120,128], index: 3, kind: input, shape index: {}]   ;;  %s1139_s4 = inlined_call_operand.hbm [shape: f32[16,128], index: 4, kind: output, shape index: {}]  }
   0x1   :  { %10 = vsyncpa [#allocation6], 0 }
   0x2   :  { %11 = vsyncpa [#allocation4], 0 }
   0x3   :  { %13 = vsyncpa [#allocation4 + $0x1], 0  ;;  %s934_s15 = smov 0   ;;  %s936_s16 = smov 0  }
   0x4   :  { %s938_s17 = smov 0   ;;  %s940_s18 = smov 0  }
   0x5 LB: > { %s955_s19 = sadd.s32 4294967295, %s899_s18   ;;  %s597_s20 = sadd.s32 4294967294, %s899_s18   ;;  %s899_s18 = sphi %s940_s18, %s1157_s18   ;;  %s895_s17 = sphi %s938_s17, %s1156_s17   ;;  %s891_s16 = sphi %s936_s16, %s1155_s16   ;;  %s887_s15 = sphi %s934_s15, %s1154_s15  }
   0x6   : > { %s959_s21 = sadd.s32 1, %s899_s18   ;;  %s120_s22 = sadd.s32 1, %s895_s17 }
   0x7   : > { %s117_s23 = ssub.s32 %s899_s18, %s959_s21  ;;  %p130_p0 = scmp.ne.s32.totalorder %s895_s17, %s891_s16 }
   0x8   : > { %p118_p1 = scmp.eq.s32.totalorder %s117_s23, 0  ;;  %p131_p2 = scmp.eq.s32.totalorder %s955_s19, 1 }
   0x9   : > { %p136_p3 = scmp.ne.s32.totalorder %s891_s16, %s887_s15  ;;  %p137_p4 = scmp.eq.s32.totalorder %s597_s20, 1 }
   0xa   : > { %s970_s24 = scalar_select %p118_p1, %s895_s17, %s120_s22  }
   0xb   : > { %p972_p5 = por %p131_p2, %p130_p0  ;;  %p976_p6 = por %p137_p4, %p136_p3 }
   0xc   : > { %p598_p7 = scmp.ge.s32.totalorder %s899_s18, 1  ;;  %p144_p8 = scmp.lt.s32.totalorder %s899_s18, 3 }
   0xd   : > { %s1143_s25 = scalar_select %p972_p5, 1, 0 }
   0xe   : > { %s1144_s26 = scalar_select %p976_p6, 1, 0 }
   0xf   : > { %p1140_p9 = scmp.eq.s32.totalorder %s955_s19, 0  ;;  %p983_p10 = pnand %p598_p7, %p144_p8 }
  0x10   : > { %s901_s28 = smov [#allocation2]   ;;  %s902_s5 = smov [#allocation5]  }
  0x11   : > { %s1145_s27 = scalar_select %p983_p10, 1, 0 }
  0x12   : > { %s156_s29 = sshll.u32 %s901_s28, 4  ;;  %p700_p11 = pneg %p983_p10  ;;  %s157_s29 = int_to_ptr.vmem [resolvable:$true] %s156_s29 }
  0x13   : > { %s169_s6 = sshll.u32 %s902_s5, 4  ;;  %s773_s9 = scalar_lea.hbm %s1137_s2, 1024  ;;  %s995_s6 = int_to_ptr.vmem [resolvable:$true] %s169_s6 }
  0x14   : > { %p991_p12 = pnand %p1140_p9, %p700_p11  ;;  %p774_p13 = scmp.ne.s32.totalorder %s1137_s2, %s773_s9 }
  0x15   : > { %p780_p3 = scmp.lt.u32.totalorder %s773_s9, %s1137_s2 }
  0x16   : > { %p775_p0 = pneg %p991_p12 }
  0x18   : > { %p776_p1 = pnand %p775_p0, %p774_p13 }
  0x1a   : > { %p777_p2 = pneg %p776_p1 }
  0x1c   : > { %p782_p4 = pnand %p780_p3, %p777_p2 }
  0x1e   : > { %785 = shalt.err (!%p782_p4)
}
  0x1f   : > { %s786_s14 = scalar_lea.vmem %s157_s29, 1024  ;;  %p794_p9 = scmp.lt.s32.totalorder %s157_s29, %s157_s29 }
  0x20   : > { %p787_p7 = scmp.ne.s32.totalorder %s157_s29, %s786_s14  ;;  %p795_p6 = scmp.lt.s32.totalorder %s786_s14, %s786_s14 }
  0x22   : > { %p789_p8 = pnand %p787_p7, %p775_p0  ;;  %p796_p5 = por %p795_p6, %p794_p9 }
  0x24   : > { %p790_p11 = pneg %p789_p8 }
  0x26   : > { %p797_p10 = pnand %p796_p5, %p790_p11 }
  0x28   : > { %800 = shalt.err (!%p797_p10)
}
  0x29   : > { %s903_s20 = smov 64   ;;  %s904_s22 = smov 4  }
  0x2a   : > { %703 = dma.hbm_to_vmem [thread:$0]  (!%p991_p12), %s1137_s2, 1024, %s157_s29, [#allocation3], %s903_s20, %s903_s20, %s904_s22  }
  0x2b   : > { %s801_s8 = scalar_lea.hbm %s1138_s3, 960 }
  0x2c   : > { %p802_p13 = scmp.ne.s32.totalorder %s1138_s3, %s801_s8  ;;  %p808_p9 = scmp.lt.u32.totalorder %s801_s8, %s1138_s3 }
  0x2e   : > { %p804_p5 = pnand %p802_p13, %p775_p0 }
  0x30   : > { %p805_p6 = pneg %p804_p5 }
  0x32   : > { %p810_p10 = pnand %p808_p9, %p805_p6 }
  0x34   : > { %813 = shalt.err (!%p810_p10)
}
  0x35   : > { %s814_s29 = scalar_lea.vmem %s995_s6, 960  ;;  %p822_p4 = scmp.lt.s32.totalorder %s995_s6, %s995_s6 }
  0x36   : > { %p815_p1 = scmp.ne.s32.totalorder %s995_s6, %s814_s29  ;;  %p823_p7 = scmp.lt.s32.totalorder %s814_s29, %s814_s29 }
  0x38   : > { %p817_p2 = pnand %p815_p1, %p775_p0  ;;  %p824_p8 = por %p823_p7, %p822_p4 }
  0x3a   : > { %p818_p3 = pneg %p817_p2 }
  0x3c   : > { %p825_p11 = pnand %p824_p8, %p818_p3 }
  0x3e   : > { %828 = shalt.err (!%p825_p11)
}
  0x3f   : > { %706 = dma.hbm_to_vmem [thread:$0]  (!%p991_p12), %s1138_s3, 960, %s995_s6, [#allocation6], %s903_s20, %s903_s20, %s904_s22  }
  0x40   : > { %p1147_p13 = scmp.ne.s32.totalorder %s1145_s27, 0 }
  0x41   : > { %p1148_p5 = scmp.eq.s32.totalorder (!%p1147_p13), %s955_s19, 0 }
  0x42   : > { %199 = sbr.rel (%p1147_p13) target bundleno = 455 (0x1c7), region = 36 }
  0x49   : > { %874 = dma.done.wait (%p1148_p5), [#allocation3], 1024   ;;  %p1149_p0 = pmov %p1148_p5 }
  0x4b   : > { %876 = vsyncadd (%p1149_p0), [#allocation3], 4294966272  ;;  %p1150_p6 = pmov %p1149_p0 }
  0x4c   : > { %p1151_p9 = pmov %p1149_p0 }
  0x4d   : > { %878 = dma.done.wait (%p1150_p6), [#allocation6], 960  }
  0x4e   : > { %880 = vsyncadd (%p1151_p9), [#allocation6], 4294966336  ;;  %p232_p10 = scmp.lt.s32.totalorder %s955_s19, 1  ;;  %v905_v0 = vmov 0   ;;  %v906_v1 = vmov 0.0   ;;  %v757_v6 = vld [vmem:[#allocation5] sm:$0xff]   ;;  %v242_v28 = vlaneseq }
  0x4f   : > { %755 = vset.pattern.permute.xlu0 %v905_v0  ;;  %756 = vset.pattern.permute.xlu1 %v905_v0  ;;  %v758_v7 = vld [vmem:[#allocation2] sm:$0xff]   ;;  %v759_v10 = vld [vmem:[#allocation5 + $0x8] sm:$0xff]   ;;  %v761_v13 = vld [vmem:[#allocation5 + $0x10] sm:$0xff]   ;;  %vm907_vm0 = vmmov 0   ;;  %vm357_vm1 = vcmask 1043456   ;;  %vm353_vm2 = vcmask 982016  }
  0x50   : > { %s1056_s27 = scalar_select %p232_p10, %s955_s19, 1  ;;  %649 = vmatprep.subr.bf16.mxu1 %v906_v1  ;;  %669 = vmatprep.subr.bf16.mxu0 %v906_v1  ;;  %v760_v11 = vld [vmem:[#allocation2 + $0x8] sm:$0xff]   ;;  %v762_v14 = vld [vmem:[#allocation2 + $0x10] sm:$0xff]   ;;  %v763_v15 = vld [vmem:[#allocation5 + $0x18] sm:$0xff]   ;;  %v243_v30 = vand.u32 127, %v242_v28 }
  0x51   : > { %650 = vmatpush3.bf16.msra.mxu1 %v757_v6  ;;  %670 = vmatpush3.bf16.msra.mxu0 %v758_v7  ;;  %v764_v16 = vld [vmem:[#allocation2 + $0x18] sm:$0xff]   ;;  %v765_v17 = vld [vmem:[#allocation5 + $0x20] sm:$0xff]   ;;  %v767_v19 = vld [vmem:[#allocation5 + $0x28] sm:$0xff]   ;;  %s229_s7 = sand.u32 1, %s891_s16   ;;  %s628_s9 = sshll.u32 %s955_s19, 7 }
  0x52   : > { %s606_s30 = sshll.u32 %s1056_s27, 3  ;;  %651 = vmatprep.subr.bf16.mxu1 %v906_v1  ;;  %671 = vmatprep.subr.bf16.mxu0 %v906_v1  ;;  %v766_v18 = vld [vmem:[#allocation2 + $0x20] sm:$0xff]   ;;  %v768_v20 = vld [vmem:[#allocation2 + $0x28] sm:$0xff]   ;;  %v769_v21 = vld [vmem:[#allocation5 + $0x30] sm:$0xff]   ;;  %vm270_vm7 = vcmp.eq.s32.totalorder %v243_v30, 104  ;;  %s605_s8 = sshll.u32 %s229_s7, 3 }
  0x53   : > { %s235_s22 = scalar_lea.vmem %s1135_s0, %s606_s30  ;;  %665 = vmatprep.mubr.msk.bf16.mxu1 %vm907_vm0, %v906_v1  ;;  %685 = vmatprep.mubr.msk.bf16.mxu0 %vm907_vm0, %v906_v1  ;;  %s239_s5 = scalar_lea.vmem %s1136_s1, %s606_s30  ;;  %v770_v22 = vld [vmem:[#allocation2 + $0x30] sm:$0xff]   ;;  %v771_v23 = vld [vmem:[#allocation5 + $0x38] ss:$0 sps:$4 sm:$0xff]  }
  0x54   : > { %v241_v2 = vld [vmem:[%s235_s22] sm:$0xff]  ;;  %v359_v25 = vsel %vm357_vm1, %v771_v23, 0  ;;  %v772_v26 = vld [vmem:[#allocation2 + $0x38] sm:$0xff]   ;;  %s231_s10 = scalar_lea.vmem [#allocation7], %s605_s8  ;;  %s1093_s13 = scalar_lea.hbm %s1139_s4, %s628_s9 }
  0x55   : > { %v244_v3 = vand.u32 255, %v241_v2  ;;  %v256_v4 = vshra.s32 %v241_v2, 16  ;;  %v249_v5 = vshra.s32 %v241_v2, 8  ;;  %v608_v12 = vshrl.u32 %v241_v2, 24  ;;  %652 = vmatpush3.bf16.msra.mxu1 %v759_v10  ;;  %672 = vmatpush3.bf16.msra.mxu0 %v760_v11  ;;  %v291_v24 = vld [vmem:[%s239_s5] sm:$0xff]  ;;  %s504_s11 = sshll.u32 %s231_s10, 4  ;;  %s1095_s11 = int_to_ptr.vmem [resolvable:$true] %s504_s11 }
  0x56   : > { %653 = vmatprep.subr.bf16.mxu1 %v906_v1  ;;  %673 = vmatprep.subr.bf16.mxu0 %v906_v1  ;;  %v292_v27 = vpack.c.bf16 %v291_v24, %v291_v24  ;;  %s491_s14 = scalar_lea.sflag [#allocation4], %s229_s7  ;;  %s829_s19 = scalar_lea.vmem %s1095_s11, 128 }
  0x57   : > { %246 = vperm.xlu0 %755, %v244_v3   ;;  %v257_v8 = vand.u32 255, %v256_v4  ;;  %v250_v9 = vand.u32 255, %v249_v5  ;;  %p830_p12 = scmp.ne.s32.totalorder %s1095_s11, %s829_s19  ;;  %p1152_p1 = scmp.ne.s32.totalorder %s1143_s25, 0 }
  0x58   : > { %s908_s27 = smov [#allocation7]  }
  0x59   : > { %259 = vperm.xlu1 %756, %v257_v8   ;;  %654 = vmatpush3.bf16.msra.mxu1 %v761_v13  ;;  %p831_p2 = pnand %p830_p12, %p1152_p1  ;;  %s833_s30 = sshll.u32 %s908_s27, 4  ;;  %s834_s30 = int_to_ptr.vmem [resolvable:$false] %s833_s30 }
  0x5a   : > { %655 = vmatprep.subr.bf16.mxu1 %v906_v1  ;;  %674 = vmatpush3.bf16.msra.mxu0 %v762_v14  ;;  %s835_s6 = scalar_lea.vmem %s834_s30, 256  ;;  %p836_p4 = scmp.lt.s32.totalorder %s1095_s11, %s834_s30 }
  0x5b   : > { %252 = vperm.xlu0 %755, %v250_v9   ;;  %675 = vmatprep.subr.bf16.mxu0 %v906_v1  ;;  %p832_p3 = pneg %p831_p2  ;;  %p837_p7 = scmp.lt.s32.totalorder %s835_s6, %s829_s19 }
  0x5d   : > { %266 = vperm.xlu1 %756, %v608_v12   ;;  %656 = vmatpush3.bf16.msra.mxu1 %v763_v15  ;;  %p838_p8 = por %p837_p7, %p836_p4 }
  0x5e   : > { %657 = vmatprep.subr.bf16.mxu1 %v906_v1  ;;  %676 = vmatpush3.bf16.msra.mxu0 %v764_v16 }
  0x5f   : > { %677 = vmatprep.subr.bf16.mxu0 %v906_v1  ;;  %p839_p11 = pnand %p838_p8, %p832_p3 }
  0x61   : > { %658 = vmatpush3.bf16.msra.mxu1 %v765_v17 }
  0x62   : > { %659 = vmatprep.subr.bf16.mxu1 %v906_v1  ;;  %678 = vmatpush3.bf16.msra.mxu0 %v766_v18 }
  0x63   : > { %679 = vmatprep.subr.bf16.mxu0 %v906_v1 }
  0x65   : > { %660 = vmatpush3.bf16.msra.mxu1 %v767_v19 }
  0x66   : > { %661 = vmatprep.subr.bf16.mxu1 %v906_v1  ;;  %680 = vmatpush3.bf16.msra.mxu0 %v768_v20 }
  0x67   : > { %681 = vmatprep.subr.bf16.mxu0 %v906_v1 }
  0x69   : > { %662 = vmatpush3.bf16.msra.mxu1 %v769_v21 }
  0x6a   : > { %663 = vmatprep.subr.bf16.mxu1 %v906_v1  ;;  %682 = vmatpush3.bf16.msra.mxu0 %v770_v22 }
  0x6b   : > { %683 = vmatprep.subr.bf16.mxu0 %v906_v1 }
  0x6d   : > { %664 = vmatpush3.bf16.msra.mxu1 %v359_v25 }
  0x6e   : > { %684 = vmatpush3.bf16.msra.mxu0 %v772_v26 }
  0x70   : > { %666 = vmatmul.mubr.msk.bf16.vlgmr.msra.gmra.mrb[0].mxu1 %vm353_vm2, %v292_v27 }
  0xd6   : > { %v247_v29 = vpop.permute.xlu0 %246 }
  0xd7   : > { %vm248_vm3 = vcmp.eq.s32.totalorder %v243_v30, %v247_v29 }
  0xd8   : > { %v260_v31 = vpop.permute.xlu1 %259 }
  0xd9   : > { %vm261_vm5 = vcmp.eq.s32.totalorder %v243_v30, %v260_v31 }
  0xda   : > { %v253_v32 = vpop.permute.xlu0 %252 }
  0xdb   : > { %vm254_vm4 = vcmp.eq.s32.totalorder %v243_v30, %v253_v32 }
  0xdc   : > { %vm255_vm6 = vmor %vm248_vm3, %vm254_vm4  ;;  %v267_v33 = vpop.permute.xlu1 %266 }
  0xdd   : > { %vm262_vm8 = vmor %vm255_vm6, %vm261_vm5  ;;  %vm268_vm9 = vcmp.eq.s32.totalorder %v243_v30, %v267_v33 }
  0xde   : > { %vm269_vm10 = vmor %vm262_vm8, %vm268_vm9 }
  0xdf   : > { %vm271_vm11 = vmor %vm269_vm10, %vm270_vm7 }
  0xe0   : > { %v609_v34 = vsel %vm271_vm11, 1.0, %v906_v1 }
  0xe1   : > { %v274_v35 = vpack.c.bf16 %v609_v34, %v609_v34 }
  0xe3   : > { %686 = vmatmul.mubr.bf16.vlgmr.msra.gmra.mrb[0].mxu0 %v274_v35 }
 0x143   : > { %v395_v36 = vpop.f32.mrb[0].mxu1 }
 0x144   : > { %v667_v37 = vpop.f32.mrb[1].mxu1 }
 0x145   : > { %v398_v38 = vpop.f32.mrb[2].mxu1 }
 0x146   : > { %v668_v39 = vpop.f32.mrb[3].mxu1 }
 0x1b6   : > { %v483_v40 = vpop.f32.mrb[0].mxu0 }
 0x1b7   : > { %v484_v41 = vadd.f32 %v483_v40, %v395_v36  ;;  %v687_v42 = vpop.f32.mrb[1].mxu0 }
 0x1b8   : > { %v486_v43 = vpop.f32.mrb[2].mxu0 }
 0x1b9   : > { %489 = vst [vmem:[%s231_s10] sm:$0xff] %v484_v41  ;;  %v688_v44 = vpop.f32.mrb[3].mxu0 }
 0x1ba   : > { %842 = shalt.err (!%p839_p11)
}
 0x1bb   : > { %s843_s20 = scalar_lea.hbm %s1093_s13, 128  ;;  %s847_s28 = scalar_lea.hbm %s1139_s4, 256 }
 0x1bc   : > { %p844_p13 = scmp.ne.s32.totalorder %s1093_s13, %s843_s20  ;;  %p848_p6 = scmp.lt.u32.totalorder %s1093_s13, %s1139_s4 }
 0x1bd   : > { %p849_p9 = scmp.lt.u32.totalorder %s847_s28, %s843_s20  ;;  %p851_p12 = scmp.lt.u32.totalorder %s843_s20, %s1093_s13 }
 0x1be   : > { %p845_p5 = pnand %p844_p13, %p1152_p1 }
 0x1bf   : > { %p850_p10 = por %p849_p9, %p848_p6 }
 0x1c0   : > { %p846_p0 = pneg %p845_p5 }
 0x1c1   : > { %p852_p2 = por %p851_p12, %p850_p10 }
 0x1c3   : > { %p853_p3 = pnand %p852_p2, %p846_p0 }
 0x1c5   : > { %856 = shalt.err (!%p853_p3)
}
 0x1c6   : > { %698 = dma.vmem_to_hbm [thread:$0]  (%p1152_p1), %s1095_s11, 128, %s1093_s13, %s491_s14  }
 0x1c7 PF: > { %p715_p4 = scmp.ge.s32.totalorder %s899_s18, 2  ;;  %s516_s8 = sand.u32 1, %s887_s15  }
 0x1c8   : > { %p1153_p7 = scmp.ne.s32.totalorder %s1144_s26, 0  ;;  %s517_s9 = scalar_lea.sflag [#allocation4], %s516_s8 }
 0x1ca   : > { %p708_p8 = pnand %p715_p4, %p1153_p7 }
 0x1cc   : > { %882 = dma.done.wait (!%p708_p8), %s517_s9, 128  }
 0x1cd   : > { %884 = vsyncadd (!%p708_p8), %s517_s9, 4294967168  ;;  %p16_p11 = scmp.ge.s32.totalorder %s959_s21, 4   ;;  %s1154_s15 = smov %s891_s16 }
 0x1ce   : > { %s1155_s16 = smov %s895_s17  ;;  %s1156_s17 = smov %s970_s24 }
 0x1cf   : > { %s1157_s18 = smov %s959_s21  ;;  %18 = sbr.rel (!%p16_p11) target bundleno = 5 (0x5), region = 83 }
 0x1d6   :  { %522 = vsyncpa [#allocation3], 1 }
 0x1d7   :  { %524 = vsyncpa [#allocation3 + $0x1], 1 }
 0x1d8   :  { %525 = vsyncpa [#allocation6], 1 }
 0x1d9   :  { %526 = vsyncpa [#allocation4], 1 }
 0x1da   :  { %528 = vsyncpa [#allocation4 + $0x1], 1 }

// kernel: tpu_custom_call.1
= control target key start
LH: loop header
LB: loop body
LE: loop exit
PB: predicated region body
PF: predicated region fallthrough
CT: control target
= control target key end

     0   :  { %9 = vsyncpa [#allocation3], 0  ;;  %s1135_s0 = inlined_call_operand.vmem [shape: s32[16,1], index: 0, kind: input, shape index: {}]   ;;  %s1136_s1 = inlined_call_operand.vmem [shape: f32[16,120], index: 1, kind: input, shape index: {}]   ;;  %s1137_s2 = inlined_call_operand.hbm [shape: bf16[128,128], index: 2, kind: input, shape index: {}]   ;;  %s1138_s3 = inlined_call_operand.hbm [shape: bf16[120,128], index: 3, kind: input, shape index: {}]   ;;  %s1139_s4 = inlined_call_operand.hbm [shape: f32[16,128], index: 4, kind: output, shape index: {}]  }
   0x1   :  { %10 = vsyncpa [#allocation6], 0 }
   0x2   :  { %11 = vsyncpa [#allocation4], 0 }
   0x3   :  { %13 = vsyncpa [#allocation4 + $0x1], 0  ;;  %s934_s15 = smov 0   ;;  %s936_s16 = smov 0  }
   0x4   :  { %s938_s17 = smov 0   ;;  %s940_s18 = smov 0  }
   0x5 LB: > { %s955_s19 = sadd.s32 4294967295, %s899_s18   ;;  %s597_s20 = sadd.s32 4294967294, %s899_s18   ;;  %s899_s18 = sphi %s940_s18, %s1157_s18   ;;  %s895_s17 = sphi %s938_s17, %s1156_s17   ;;  %s891_s16 = sphi %s936_s16, %s1155_s16   ;;  %s887_s15 = sphi %s934_s15, %s1154_s15  }
   0x6   : > { %s959_s21 = sadd.s32 1, %s899_s18   ;;  %s120_s22 = sadd.s32 1, %s895_s17 }
   0x7   : > { %s117_s23 = ssub.s32 %s899_s18, %s959_s21  ;;  %p130_p0 = scmp.ne.s32.totalorder %s895_s17, %s891_s16 }
   0x8   : > { %p118_p1 = scmp.eq.s32.totalorder %s117_s23, 0  ;;  %p131_p2 = scmp.eq.s32.totalorder %s955_s19, 1 }
   0x9   : > { %p136_p3 = scmp.ne.s32.totalorder %s891_s16, %s887_s15  ;;  %p137_p4 = scmp.eq.s32.totalorder %s597_s20, 1 }
   0xa   : > { %s970_s24 = scalar_select %p118_p1, %s895_s17, %s120_s22  }
   0xb   : > { %p972_p5 = por %p131_p2, %p130_p0  ;;  %p976_p6 = por %p137_p4, %p136_p3 }
   0xc   : > { %p598_p7 = scmp.ge.s32.totalorder %s899_s18, 1  ;;  %p144_p8 = scmp.lt.s32.totalorder %s899_s18, 3 }
   0xd   : > { %s1143_s25 = scalar_select %p972_p5, 1, 0 }
   0xe   : > { %s1144_s26 = scalar_select %p976_p6, 1, 0 }
   0xf   : > { %p1140_p9 = scmp.eq.s32.totalorder %s955_s19, 0  ;;  %p983_p10 = pnand %p598_p7, %p144_p8 }
  0x10   : > { %s901_s28 = smov [#allocation2]   ;;  %s902_s5 = smov [#allocation5]  }
  0x11   : > { %s1145_s27 = scalar_select %p983_p10, 1, 0 }
  0x12   : > { %s156_s29 = sshll.u32 %s901_s28, 4  ;;  %p700_p11 = pneg %p983_p10  ;;  %s157_s29 = int_to_ptr.vmem [resolvable:$true] %s156_s29 }
  0x13   : > { %s169_s6 = sshll.u32 %s902_s5, 4  ;;  %s773_s9 = scalar_lea.hbm %s1137_s2, 1024  ;;  %s995_s6 = int_to_ptr.vmem [resolvable:$true] %s169_s6 }
  0x14   : > { %p991_p12 = pnand %p1140_p9, %p700_p11  ;;  %p774_p13 = scmp.ne.s32.totalorder %s1137_s2, %s773_s9 }
  0x15   : > { %p780_p3 = scmp.lt.u32.totalorder %s773_s9, %s1137_s2 }
  0x16   : > { %p775_p0 = pneg %p991_p12 }
  0x18   : > { %p776_p1 = pnand %p775_p0, %p774_p13 }
  0x1a   : > { %p777_p2 = pneg %p776_p1 }
  0x1c   : > { %p782_p4 = pnand %p780_p3, %p777_p2 }
  0x1e   : > { %785 = shalt.err (!%p782_p4)
}
  0x1f   : > { %s786_s14 = scalar_lea.vmem %s157_s29, 1024  ;;  %p794_p9 = scmp.lt.s32.totalorder %s157_s29, %s157_s29 }
  0x20   : > { %p787_p7 = scmp.ne.s32.totalorder %s157_s29, %s786_s14  ;;  %p795_p6 = scmp.lt.s32.totalorder %s786_s14, %s786_s14 }
  0x22   : > { %p789_p8 = pnand %p787_p7, %p775_p0  ;;  %p796_p5 = por %p795_p6, %p794_p9 }
  0x24   : > { %p790_p11 = pneg %p789_p8 }
  0x26   : > { %p797_p10 = pnand %p796_p5, %p790_p11 }
  0x28   : > { %800 = shalt.err (!%p797_p10)
}
  0x29   : > { %s903_s20 = smov 64   ;;  %s904_s22 = smov 4  }
  0x2a   : > { %703 = dma.hbm_to_vmem [thread:$0]  (!%p991_p12), %s1137_s2, 1024, %s157_s29, [#allocation3], %s903_s20, %s903_s20, %s904_s22  }
  0x2b   : > { %s801_s8 = scalar_lea.hbm %s1138_s3, 960 }
  0x2c   : > { %p802_p13 = scmp.ne.s32.totalorder %s1138_s3, %s801_s8  ;;  %p808_p9 = scmp.lt.u32.totalorder %s801_s8, %s1138_s3 }
  0x2e   : > { %p804_p5 = pnand %p802_p13, %p775_p0 }
  0x30   : > { %p805_p6 = pneg %p804_p5 }
  0x32   : > { %p810_p10 = pnand %p808_p9, %p805_p6 }
  0x34   : > { %813 = shalt.err (!%p810_p10)
}
  0x35   : > { %s814_s29 = scalar_lea.vmem %s995_s6, 960  ;;  %p822_p4 = scmp.lt.s32.totalorder %s995_s6, %s995_s6 }
  0x36   : > { %p815_p1 = scmp.ne.s32.totalorder %s995_s6, %s814_s29  ;;  %p823_p7 = scmp.lt.s32.totalorder %s814_s29, %s814_s29 }
  0x38   : > { %p817_p2 = pnand %p815_p1, %p775_p0  ;;  %p824_p8 = por %p823_p7, %p822_p4 }
  0x3a   : > { %p818_p3 = pneg %p817_p2 }
  0x3c   : > { %p825_p11 = pnand %p824_p8, %p818_p3 }
  0x3e   : > { %828 = shalt.err (!%p825_p11)
}
  0x3f   : > { %706 = dma.hbm_to_vmem [thread:$0]  (!%p991_p12), %s1138_s3, 960, %s995_s6, [#allocation6], %s903_s20, %s903_s20, %s904_s22  }
  0x40   : > { %p1147_p13 = scmp.ne.s32.totalorder %s1145_s27, 0 }
  0x41   : > { %p1148_p5 = scmp.eq.s32.totalorder (!%p1147_p13), %s955_s19, 0 }
  0x42   : > { %199 = sbr.rel (%p1147_p13) target bundleno = 455 (0x1c7), region = 36 }
  0x49   : > { %874 = dma.done.wait (%p1148_p5), [#allocation3], 1024   ;;  %p1149_p0 = pmov %p1148_p5 }
  0x4b   : > { %876 = vsyncadd (%p1149_p0), [#allocation3], 4294966272  ;;  %p1150_p6 = pmov %p1149_p0 }
  0x4c   : > { %p1151_p9 = pmov %p1149_p0 }
  0x4d   : > { %878 = dma.done.wait (%p1150_p6), [#allocation6], 960  }
  0x4e   : > { %880 = vsyncadd (%p1151_p9), [#allocation6], 4294966336  ;;  %p232_p10 = scmp.lt.s32.totalorder %s955_s19, 1  ;;  %v905_v0 = vmov 0   ;;  %v906_v1 = vmov 0.0   ;;  %v757_v6 = vld [vmem:[#allocation5] sm:$0xff]   ;;  %v242_v28 = vlaneseq }
  0x4f   : > { %755 = vset.pattern.permute.xlu0 %v905_v0  ;;  %756 = vset.pattern.permute.xlu1 %v905_v0  ;;  %v758_v7 = vld [vmem:[#allocation2] sm:$0xff]   ;;  %v759_v10 = vld [vmem:[#allocation5 + $0x8] sm:$0xff]   ;;  %v761_v13 = vld [vmem:[#allocation5 + $0x10] sm:$0xff]   ;;  %vm907_vm0 = vmmov 0   ;;  %vm357_vm1 = vcmask 1043456   ;;  %vm353_vm2 = vcmask 982016  }
  0x50   : > { %s1056_s27 = scalar_select %p232_p10, %s955_s19, 1  ;;  %649 = vmatprep.subr.bf16.mxu1 %v906_v1  ;;  %669 = vmatprep.subr.bf16.mxu0 %v906_v1  ;;  %v760_v11 = vld [vmem:[#allocation2 + $0x8] sm:$0xff]   ;;  %v762_v14 = vld [vmem:[#allocation2 + $0x10] sm:$0xff]   ;;  %v763_v15 = vld [vmem:[#allocation5 + $0x18] sm:$0xff]   ;;  %v243_v30 = vand.u32 127, %v242_v28 }
  0x51   : > { %650 = vmatpush3.bf16.msra.mxu1 %v757_v6  ;;  %670 = vmatpush3.bf16.msra.mxu0 %v758_v7  ;;  %v764_v16 = vld [vmem:[#allocation2 + $0x18] sm:$0xff]   ;;  %v765_v17 = vld [vmem:[#allocation5 + $0x20] sm:$0xff]   ;;  %v767_v19 = vld [vmem:[#allocation5 + $0x28] sm:$0xff]   ;;  %s229_s7 = sand.u32 1, %s891_s16   ;;  %s628_s9 = sshll.u32 %s955_s19, 7 }
  0x52   : > { %s606_s30 = sshll.u32 %s1056_s27, 3  ;;  %651 = vmatprep.subr.bf16.mxu1 %v906_v1  ;;  %671 = vmatprep.subr.bf16.mxu0 %v906_v1  ;;  %v766_v18 = vld [vmem:[#allocation2 + $0x20] sm:$0xff]   ;;  %v768_v20 = vld [vmem:[#allocation2 + $0x28] sm:$0xff]   ;;  %v769_v21 = vld [vmem:[#allocation5 + $0x30] sm:$0xff]   ;;  %vm270_vm7 = vcmp.eq.s32.totalorder %v243_v30, 104  ;;  %s605_s8 = sshll.u32 %s229_s7, 3 }
  0x53   : > { %s235_s22 = scalar_lea.vmem %s1135_s0, %s606_s30  ;;  %665 = vmatprep.mubr.msk.bf16.mxu1 %vm907_vm0, %v906_v1  ;;  %685 = vmatprep.mubr.msk.bf16.mxu0 %vm907_vm0, %v906_v1  ;;  %s239_s5 = scalar_lea.vmem %s1136_s1, %s606_s30  ;;  %v770_v22 = vld [vmem:[#allocation2 + $0x30] sm:$0xff]   ;;  %v771_v23 = vld [vmem:[#allocation5 + $0x38] ss:$0 sps:$4 sm:$0xff]  }
  0x54   : > { %v241_v2 = vld [vmem:[%s235_s22] sm:$0xff]  ;;  %v359_v25 = vsel %vm357_vm1, %v771_v23, 0  ;;  %v772_v26 = vld [vmem:[#allocation2 + $0x38] sm:$0xff]   ;;  %s231_s10 = scalar_lea.vmem [#allocation7], %s605_s8  ;;  %s1093_s13 = scalar_lea.hbm %s1139_s4, %s628_s9 }
  0x55   : > { %v244_v3 = vand.u32 255, %v241_v2  ;;  %v256_v4 = vshra.s32 %v241_v2, 16  ;;  %v249_v5 = vshra.s32 %v241_v2, 8  ;;  %v608_v12 = vshrl.u32 %v241_v2, 24  ;;  %652 = vmatpush3.bf16.msra.mxu1 %v759_v10  ;;  %672 = vmatpush3.bf16.msra.mxu0 %v760_v11  ;;  %v291_v24 = vld [vmem:[%s239_s5] sm:$0xff]  ;;  %s504_s11 = sshll.u32 %s231_s10, 4  ;;  %s1095_s11 = int_to_ptr.vmem [resolvable:$true] %s504_s11 }
  0x56   : > { %653 = vmatprep.subr.bf16.mxu1 %v906_v1  ;;  %673 = vmatprep.subr.bf16.mxu0 %v906_v1  ;;  %v292_v27 = vpack.c.bf16 %v291_v24, %v291_v24  ;;  %s491_s14 = scalar_lea.sflag [#allocation4], %s229_s7  ;;  %s829_s19 = scalar_lea.vmem %s1095_s11, 128 }
  0x57   : > { %246 = vperm.xlu0 %755, %v244_v3   ;;  %v257_v8 = vand.u32 255, %v256_v4  ;;  %v250_v9 = vand.u32 255, %v249_v5  ;;  %p830_p12 = scmp.ne.s32.totalorder %s1095_s11, %s829_s19  ;;  %p1152_p1 = scmp.ne.s32.totalorder %s1143_s25, 0 }
  0x58   : > { %s908_s27 = smov [#allocation7]  }
  0x59   : > { %259 = vperm.xlu1 %756, %v257_v8   ;;  %654 = vmatpush3.bf16.msra.mxu1 %v761_v13  ;;  %p831_p2 = pnand %p830_p12, %p1152_p1  ;;  %s833_s30 = sshll.u32 %s908_s27, 4  ;;  %s834_s30 = int_to_ptr.vmem [resolvable:$false] %s833_s30 }
  0x5a   : > { %655 = vmatprep.subr.bf16.mxu1 %v906_v1  ;;  %674 = vmatpush3.bf16.msra.mxu0 %v762_v14  ;;  %s835_s6 = scalar_lea.vmem %s834_s30, 256  ;;  %p836_p4 = scmp.lt.s32.totalorder %s1095_s11, %s834_s30 }
  0x5b   : > { %252 = vperm.xlu0 %755, %v250_v9   ;;  %675 = vmatprep.subr.bf16.mxu0 %v906_v1  ;;  %p832_p3 = pneg %p831_p2  ;;  %p837_p7 = scmp.lt.s32.totalorder %s835_s6, %s829_s19 }
  0x5d   : > { %266 = vperm.xlu1 %756, %v608_v12   ;;  %656 = vmatpush3.bf16.msra.mxu1 %v763_v15  ;;  %p838_p8 = por %p837_p7, %p836_p4 }
  0x5e   : > { %657 = vmatprep.subr.bf16.mxu1 %v906_v1  ;;  %676 = vmatpush3.bf16.msra.mxu0 %v764_v16 }
  0x5f   : > { %677 = vmatprep.subr.bf16.mxu0 %v906_v1  ;;  %p839_p11 = pnand %p838_p8, %p832_p3 }
  0x61   : > { %658 = vmatpush3.bf16.msra.mxu1 %v765_v17 }
  0x62   : > { %659 = vmatprep.subr.bf16.mxu1 %v906_v1  ;;  %678 = vmatpush3.bf16.msra.mxu0 %v766_v18 }
  0x63   : > { %679 = vmatprep.subr.bf16.mxu0 %v906_v1 }
  0x65   : > { %660 = vmatpush3.bf16.msra.mxu1 %v767_v19 }
  0x66   : > { %661 = vmatprep.subr.bf16.mxu1 %v906_v1  ;;  %680 = vmatpush3.bf16.msra.mxu0 %v768_v20 }
  0x67   : > { %681 = vmatprep.subr.bf16.mxu0 %v906_v1 }
  0x69   : > { %662 = vmatpush3.bf16.msra.mxu1 %v769_v21 }
  0x6a   : > { %663 = vmatprep.subr.bf16.mxu1 %v906_v1  ;;  %682 = vmatpush3.bf16.msra.mxu0 %v770_v22 }
  0x6b   : > { %683 = vmatprep.subr.bf16.mxu0 %v906_v1 }
  0x6d   : > { %664 = vmatpush3.bf16.msra.mxu1 %v359_v25 }
  0x6e   : > { %684 = vmatpush3.bf16.msra.mxu0 %v772_v26 }
  0x70   : > { %666 = vmatmul.mubr.msk.bf16.vlgmr.msra.gmra.mrb[0].mxu1 %vm353_vm2, %v292_v27 }
  0xd6   : > { %v247_v29 = vpop.permute.xlu0 %246 }
  0xd7   : > { %vm248_vm3 = vcmp.eq.s32.totalorder %v243_v30, %v247_v29 }
  0xd8   : > { %v260_v31 = vpop.permute.xlu1 %259 }
  0xd9   : > { %vm261_vm5 = vcmp.eq.s32.totalorder %v243_v30, %v260_v31 }
  0xda   : > { %v253_v32 = vpop.permute.xlu0 %252 }
  0xdb   : > { %vm254_vm4 = vcmp.eq.s32.totalorder %v243_v30, %v253_v32 }
  0xdc   : > { %vm255_vm6 = vmor %vm248_vm3, %vm254_vm4  ;;  %v267_v33 = vpop.permute.xlu1 %266 }
  0xdd   : > { %vm262_vm8 = vmor %vm255_vm6, %vm261_vm5  ;;  %vm268_vm9 = vcmp.eq.s32.totalorder %v243_v30, %v267_v33 }
  0xde   : > { %vm269_vm10 = vmor %vm262_vm8, %vm268_vm9 }
  0xdf   : > { %vm271_vm11 = vmor %vm269_vm10, %vm270_vm7 }
  0xe0   : > { %v609_v34 = vsel %vm271_vm11, 1.0, %v906_v1 }
  0xe1   : > { %v274_v35 = vpack.c.bf16 %v609_v34, %v609_v34 }
  0xe3   : > { %686 = vmatmul.mubr.bf16.vlgmr.msra.gmra.mrb[0].mxu0 %v274_v35 }
 0x143   : > { %v395_v36 = vpop.f32.mrb[0].mxu1 }
 0x144   : > { %v667_v37 = vpop.f32.mrb[1].mxu1 }
 0x145   : > { %v398_v38 = vpop.f32.mrb[2].mxu1 }
 0x146   : > { %v668_v39 = vpop.f32.mrb[3].mxu1 }
 0x1b6   : > { %v483_v40 = vpop.f32.mrb[0].mxu0 }
 0x1b7   : > { %v484_v41 = vadd.f32 %v483_v40, %v395_v36  ;;  %v687_v42 = vpop.f32.mrb[1].mxu0 }
 0x1b8   : > { %v486_v43 = vpop.f32.mrb[2].mxu0 }
 0x1b9   : > { %489 = vst [vmem:[%s231_s10] sm:$0xff] %v484_v41  ;;  %v688_v44 = vpop.f32.mrb[3].mxu0 }
 0x1ba   : > { %842 = shalt.err (!%p839_p11)
}
 0x1bb   : > { %s843_s20 = scalar_lea.hbm %s1093_s13, 128  ;;  %s847_s28 = scalar_lea.hbm %s1139_s4, 256 }
 0x1bc   : > { %p844_p13 = scmp.ne.s32.totalorder %s1093_s13, %s843_s20  ;;  %p848_p6 = scmp.lt.u32.totalorder %s1093_s13, %s1139_s4 }
 0x1bd   : > { %p849_p9 = scmp.lt.u32.totalorder %s847_s28, %s843_s20  ;;  %p851_p12 = scmp.lt.u32.totalorder %s843_s20, %s1093_s13 }
 0x1be   : > { %p845_p5 = pnand %p844_p13, %p1152_p1 }
 0x1bf   : > { %p850_p10 = por %p849_p9, %p848_p6 }
 0x1c0   : > { %p846_p0 = pneg %p845_p5 }
 0x1c1   : > { %p852_p2 = por %p851_p12, %p850_p10 }
 0x1c3   : > { %p853_p3 = pnand %p852_p2, %p846_p0 }
 0x1c5   : > { %856 = shalt.err (!%p853_p3)
}
 0x1c6   : > { %698 = dma.vmem_to_hbm [thread:$0]  (%p1152_p1), %s1095_s11, 128, %s1093_s13, %s491_s14  }
 0x1c7 PF: > { %p715_p4 = scmp.ge.s32.totalorder %s899_s18, 2  ;;  %s516_s8 = sand.u32 1, %s887_s15  }
 0x1c8   : > { %p1153_p7 = scmp.ne.s32.totalorder %s1144_s26, 0  ;;  %s517_s9 = scalar_lea.sflag [#allocation4], %s516_s8 }
 0x1ca   : > { %p708_p8 = pnand %p715_p4, %p1153_p7 }
 0x1cc   : > { %882 = dma.done.wait (!%p708_p8), %s517_s9, 128  }
 0x1cd   : > { %884 = vsyncadd (!%p708_p8), %s517_s9, 4294967168  ;;  %p16_p11 = scmp.ge.s32.totalorder %s959_s21, 4   ;;  %s1154_s15 = smov %s891_s16 }
 0x1ce   : > { %s1155_s16 = smov %s895_s17  ;;  %s1156_s17 = smov %s970_s24 }
 0x1cf   : > { %s1157_s18 = smov %s959_s21  ;;  %18 = sbr.rel (!%p16_p11) target bundleno = 5 (0x5), region = 83 }
 0x1d6   :  { %522 = vsyncpa [#allocation3], 1 }
 0x1d7   :  { %524 = vsyncpa [#allocation3 + $0x1], 1 }
 0x1d8   :  { %525 = vsyncpa [#allocation6], 1 }
 0x1d9   :  { %526 = vsyncpa [#allocation4], 1 }
 0x1da   :  { %528 = vsyncpa [#allocation4 + $0x1], 1 }

</bundles_post_ra>
